<compile_context>
chip_gen: v6e
topology: v6e:2x2x1
jax: 0.10.0
libtpu: 0.0.40
codegen_flags: <defaults>
</compile_context>

<pallas_src>
import functools

import jax
import jax.numpy as jnp
from jax import lax
from jax.experimental import pallas as pl
from jax.experimental.pallas import tpu as pltpu

EPS = 1e-5


def _round_up(x, m):
    return (x + m - 1) // m * m


def _sublane(dtype):
    return {4: 8, 2: 16, 1: 32}.get(jnp.dtype(dtype).itemsize, 8)


# ----------------------------------------------------------------------------
# Shared per-tile math
# ----------------------------------------------------------------------------
def _linear_ln_relu(x, w, b, gamma, beta, hidden):
    """ReLU(LayerNorm(x @ w + b)) for one (tile_n, d_in) tile -> (tile_n, H) f32."""
    y = jnp.dot(x, w, preferred_element_type=jnp.float32) + b
    inv_h = 1.0 / hidden
    mean = jnp.sum(y, axis=-1, keepdims=True) * inv_h
    meansq = jnp.sum(y * y, axis=-1, keepdims=True) * inv_h
    var = jnp.maximum(meansq - mean * mean, 0.0)      # guard vs. cancellation
    yn = (y - mean) * lax.rsqrt(var + EPS)
    yn = yn * gamma + beta
    return jnp.maximum(yn, 0.0)                       # fX >= 0


def _tile_group_max(fx, ids, num_groups, g_pad, hidden):
    """Per-tile (g_pad, H) group max; identity 0.0 is valid since fx >= 0."""
    rows = [jnp.max(jnp.where(ids == g, fx, 0.0), axis=0, keepdims=True)
            for g in range(num_groups)]              # small static G
    if g_pad > num_groups:
        rows.append(jnp.zeros((g_pad - num_groups, hidden), jnp.float32))
    return jnp.concatenate(rows, axis=0)
    # TODO(synk): for large num_groups, process groups in sublane chunks instead
    # of G independent where+max passes (keeps the kernel HBM-bound).


def _gather_and_store(fx, ids, gm, out_ref, hidden, g_pad):
    """out = [fx | gm[ids]] via exact one-hot f32 MXU gather; lane-dense store."""
    giota = lax.broadcasted_iota(jnp.int32, (ids.shape[0], g_pad), 1)
    onehot = (ids == giota).astype(jnp.float32)
    gathered = jnp.dot(onehot, gm, preferred_element_type=jnp.float32)
    if hidden % 128 == 0:                             # halves are already lane-dense
        out_ref[:, :hidden] = fx.astype(out_ref.dtype)
        out_ref[:, hidden:] = gathered.astype(out_ref.dtype)
    else:                                             # single full-lane store
        out_ref[...] = jnp.concatenate([fx, gathered], axis=-1).astype(out_ref.dtype)


# ----------------------------------------------------------------------------
# Fused kernel: grid = (2 passes, num_tiles)
# ----------------------------------------------------------------------------
def _fused_kernel(x_ref, w_ref, b_ref, gamma_ref, beta_ref, ids_ref,
                  out_ref, fx_scr, gm_scr, *,
                  hidden, num_groups, g_pad, n_total, tile_n):
    p = pl.program_id(0)        # 0: fX + group max, 1: gather + write output
    t = pl.program_id(1)

    @pl.when(jnp.logical_and(p == 0, t == 0))
    def _():
        gm_scr[...] = jnp.zeros_like(gm_scr)

    @pl.when(p == 0)
    def _():
        fx = _linear_ln_relu(x_ref[...], w_ref[...], b_ref[...],
                             gamma_ref[...], beta_ref[...], hidden)
        # Ragged tail rows hold undefined data -> zero them (max identity).
        row = t * tile_n + lax.broadcasted_iota(jnp.int32, fx.shape, 0)
        fx = jnp.where(row < n_total, fx, 0.0)
        fx_scr[t] = fx                                # VMEM-resident, no HBM trip
        local = _tile_group_max(fx, ids_ref[...], num_groups, g_pad, hidden)
        gm_scr[...] = jnp.maximum(gm_scr[...], local)  # one full-block store/step

    @pl.when(p == 1)
    def _():
        _gather_and_store(fx_scr[t], ids_ref[...], gm_scr[...],
                          out_ref, hidden, g_pad)


# ----------------------------------------------------------------------------
# Fallback (fX too big for VMEM): two calls, bf16 fX intermediate
# ----------------------------------------------------------------------------
def _phase1_kernel(x_ref, w_ref, b_ref, gamma_ref, beta_ref, ids_ref,
                   fx_ref, gm_ref, *,
                   hidden, num_groups, g_pad, n_total, tile_n):
    t = pl.program_id(0)

    @pl.when(t == 0)
    def _():
        gm_ref[...] = jnp.zeros_like(gm_ref)

    fx = _linear_ln_relu(x_ref[...], w_ref[...], b_ref[...],
                         gamma_ref[...], beta_ref[...], hidden)
    row = t * tile_n + lax.broadcasted_iota(jnp.int32, fx.shape, 0)
    fx = jnp.where(row < n_total, fx, 0.0)
    fx_ref[...] = fx.astype(fx_ref.dtype)             # bf16 -> half the HBM bytes
    local = _tile_group_max(fx, ids_ref[...], num_groups, g_pad, hidden)
    gm_ref[...] = jnp.maximum(gm_ref[...], local)


def _phase2_kernel(fx_ref, ids_ref, gm_ref, out_ref, *, hidden, g_pad):
    _gather_and_store(fx_ref[...].astype(jnp.float32), ids_ref[...],
                      gm_ref[...], out_ref, hidden, g_pad)


# ----------------------------------------------------------------------------
# Wrapper
# ----------------------------------------------------------------------------
def _fused_vmem_bytes(num_tiles, tile_n, d_in, hidden, g_pad, x_itemsize):
    lane = lambda n: _round_up(n, 128)
    fx_scr = num_tiles * tile_n * lane(hidden) * 4
    gm_scr = _round_up(g_pad, 8) * lane(hidden) * 4
    x_blk = 2 * tile_n * lane(d_in) * x_itemsize
    w_blk = 2 * _round_up(d_in, 8) * lane(hidden) * x_itemsize
    vec_blk = 3 * 2 * 8 * lane(hidden) * 4
    ids_blk = 2 * tile_n * 128 * 4
    out_blk = 2 * tile_n * lane(2 * hidden) * 4
    return fx_scr + gm_scr + x_blk + w_blk + vec_blk + ids_blk + out_blk


def subgraph_forward(X, i, W, b, gamma, beta, *, num_groups,
                     tile_n=1024, mxu_dtype=None, force_unfused=False,
                     unfused_fx_dtype=jnp.bfloat16,
                     fused_vmem_cap_bytes=48 * 1024 * 1024):
    """X: (N, D_in), i: (N, 1) int cluster ids in [0, num_groups)."""
    N, d_in = X.shape
    H = W.shape[1]
    ids = i.astype(jnp.int32).reshape(N, 1)

    if mxu_dtype is not None and X.dtype != jnp.dtype(mxu_dtype):
        # Only pays off if the caller can keep X/W in this dtype already; the
        # cast is an extra full XLA pass over X, and the MXU is not the bottleneck.
        X = X.astype(mxu_dtype)
        W = W.astype(mxu_dtype)

    g_pad = _round_up(num_groups, 8)

    def _tiling(sub):
        tn = max(sub, min(_round_up(tile_n, sub), _round_up(N, sub)))
        return tn, int(pl.cdiv(N, tn))

    tn, num_tiles = _tiling(_sublane(X.dtype))
    est = _fused_vmem_bytes(num_tiles, tn, d_in, H, g_pad,
                            jnp.dtype(X.dtype).itemsize)
    use_fused = (not force_unfused) and est <= fused_vmem_cap_bytes

    b2 = b.reshape(1, H).astype(jnp.float32)
    g2 = gamma.reshape(1, H).astype(jnp.float32)
    be2 = beta.reshape(1, H).astype(jnp.float32)

    if use_fused:
        # X index map: follow the tile in pass 0, park on the last block in
        # pass 1 (no re-DMA of X during the gather pass).
        x_map = lambda p, t: (t * (1 - p) + (num_tiles - 1) * p, 0)
        # Out index map: stay on block 0 during pass 0 (never flushed with
        # garbage -- index only changes once real data is written in pass 1).
        out_map = lambda p, t: (t * p, 0)
        vmem_limit = int(min(max(est + (8 << 20), 32 << 20), 60 << 20))
        return pl.pallas_call(
            functools.partial(_fused_kernel, hidden=H, num_groups=num_groups,
                              g_pad=g_pad, n_total=N, tile_n=tn),
            grid=(2, num_tiles),
            in_specs=[
                pl.BlockSpec((tn, d_in), x_map),                 # X tile
                pl.BlockSpec((d_in, H), lambda p, t: (0, 0)),    # W (resident)
                pl.BlockSpec((1, H), lambda p, t: (0, 0)),       # bias
                pl.BlockSpec((1, H), lambda p, t: (0, 0)),       # gamma
                pl.BlockSpec((1, H), lambda p, t: (0, 0)),       # beta
                pl.BlockSpec((tn, 1), lambda p, t: (t, 0)),      # ids tile
            ],
            out_specs=pl.BlockSpec((tn, 2 * H), out_map),
            out_shape=jax.ShapeDtypeStruct((N, 2 * H), jnp.float32),
            scratch_shapes=[
                pltpu.VMEM((num_tiles, tn, H), jnp.float32),     # fX (VMEM-resident)
                pltpu.VMEM((g_pad, H), jnp.float32),             # running group max
            ],
            compiler_params=pltpu.CompilerParams(
                dimension_semantics=("arbitrary", "arbitrary"),
                vmem_limit_bytes=vmem_limit),
        )(X, W, b2, g2, be2, ids)
        # Megacore note: both grid axes must stay sequential here (gm/fx scratch
        # carried across tiles); since the kernel is HBM-bound, splitting across
        # v7x's two TensorCores would not add bandwidth anyway.

    # ---------------- fallback: two calls, bf16 fX intermediate --------------
    sub = max(_sublane(X.dtype), _sublane(unfused_fx_dtype))
    tn, num_tiles = _tiling(sub)

    fx, gm = pl.pallas_call(
        functools.partial(_phase1_kernel, hidden=H, num_groups=num_groups,
                          g_pad=g_pad, n_total=N, tile_n=tn),
        grid=(num_tiles,),
        in_specs=[
            pl.BlockSpec((tn, d_in), lambda t: (t, 0)),
            pl.BlockSpec((d_in, H), lambda t: (0, 0)),
            pl.BlockSpec((1, H), lambda t: (0, 0)),
            pl.BlockSpec((1, H), lambda t: (0, 0)),
            pl.BlockSpec((1, H), lambda t: (0, 0)),
            pl.BlockSpec((tn, 1), lambda t: (t, 0)),
        ],
        out_specs=[
            pl.BlockSpec((tn, H), lambda t: (t, 0)),             # fX (bf16)
            pl.BlockSpec((g_pad, H), lambda t: (0, 0)),          # group max (acc)
        ],
        out_shape=[
            jax.ShapeDtypeStruct((N, H), unfused_fx_dtype),
            jax.ShapeDtypeStruct((g_pad, H), jnp.float32),
        ],
        compiler_params=pltpu.CompilerParams(
            dimension_semantics=("arbitrary",)),     # gm accumulation across tiles
    )(X, W, b2, g2, be2, ids)
    # TODO(synk): on v7x, emit per-core partial group maxima (leading parallel
    # axis of size 2) and reduce them here so both TensorCores run phase 1.

    return pl.pallas_call(
        functools.partial(_phase2_kernel, hidden=H, g_pad=g_pad),
        grid=(num_tiles,),
        in_specs=[
            pl.BlockSpec((tn, H), lambda t: (t, 0)),
            pl.BlockSpec((tn, 1), lambda t: (t, 0)),
            pl.BlockSpec((g_pad, H), lambda t: (0, 0)),
        ],
        out_specs=pl.BlockSpec((tn, 2 * H), lambda t: (t, 0)),
        out_shape=jax.ShapeDtypeStruct((N, 2 * H), jnp.float32),
        compiler_params=pltpu.CompilerParams(
            dimension_semantics=("parallel",)),      # both TCs on v7x
    )(fx, ids, gm)


# ----------------------------------------------------------------------------
# Pure-JAX reference mirroring the PyTorch module
# ----------------------------------------------------------------------------
def subgraph_reference(X, i, W, b, gamma, beta):
    y = X @ W + b
    mean = jnp.mean(y, axis=-1, keepdims=True)
    var = jnp.mean((y - mean) ** 2, axis=-1, keepdims=True)
    yn = (y - mean) / jnp.sqrt(var + EPS) * gamma + beta
    fX = jnp.maximum(yn, 0.0)
    ids = i.reshape(-1)
    mask = ids[:, None] == ids[None, :]
    gathered = jnp.max(jnp.where(mask[:, :, None], fX[None, :, :], -jnp.inf), axis=1)
    return jnp.concatenate([fX, gathered], axis=1)


if __name__ == "__main__":
    D_IN, HIDDEN = 64, 64

    key = jax.random.PRNGKey(0)
    kw, kb, kg, kbe = jax.random.split(key, 4)
    W = jax.random.normal(kw, (D_IN, HIDDEN), dtype=jnp.float32) / jnp.sqrt(D_IN)
    b = 0.01 * jax.random.normal(kb, (HIDDEN,), dtype=jnp.float32)
    gamma = 1.0 + 0.1 * jax.random.normal(kg, (HIDDEN,), dtype=jnp.float32)
    beta = 0.1 * jax.random.normal(kbe, (HIDDEN,), dtype=jnp.float32)

    # --- Test 1: small single-tile, fused f32 path (tight tolerance) ---------
    N1, G1 = 8, 3
    k1, k2 = jax.random.split(jax.random.PRNGKey(1))
    X1 = jax.random.normal(k1, (N1, D_IN), dtype=jnp.float32)
    i1 = jax.random.randint(k2, (N1, 1), 0, G1, dtype=jnp.int32)
    ref1 = subgraph_reference(X1, i1, W, b, gamma, beta)
    out1 = jax.block_until_ready(subgraph_forward(
        X1, i1, W, b, gamma, beta, num_groups=G1))
    assert out1.shape == (N1, 2 * HIDDEN)
    assert jnp.allclose(out1, ref1, atol=1e-4, rtol=1e-4), "fused f32 mismatch"

    # --- Test 2: bf16 MXU operands (looser tolerance) -------------------------
    N2, G2 = 32, 4
    k3, k4 = jax.random.split(jax.random.PRNGKey(2))
    X2 = jax.random.normal(k3, (N2, D_IN), dtype=jnp.float32)
    i2 = jax.random.randint(k4, (N2, 1), 0, G2, dtype=jnp.int32)
    ref2 = subgraph_reference(X2, i2, W, b, gamma, beta)
    out2 = jax.block_until_ready(subgraph_forward(
        X2, i2, W, b, gamma, beta, num_groups=G2, mxu_dtype=jnp.bfloat16))
    assert jnp.allclose(out2, ref2, atol=3e-2, rtol=3e-2), "fused bf16 mismatch"

    # --- Test 3: multi-tile + ragged tail, fused f32 (tight tolerance) -------
    N3, G3 = 20, 5
    k5, k6 = jax.random.split(jax.random.PRNGKey(3))
    X3 = jax.random.normal(k5, (N3, D_IN), dtype=jnp.float32)
    i3 = jax.random.randint(k6, (N3, 1), 0, G3, dtype=jnp.int32)
    ref3 = subgraph_reference(X3, i3, W, b, gamma, beta)
    out3 = jax.block_until_ready(subgraph_forward(
        X3, i3, W, b, gamma, beta, num_groups=G3, tile_n=8))
    assert out3.shape == (N3, 2 * HIDDEN)
    assert jnp.allclose(out3, ref3, atol=1e-4, rtol=1e-4), "fused ragged mismatch"

    # --- Test 4: forced two-call fallback (bf16 fX intermediate) -------------
    out4 = jax.block_until_ready(subgraph_forward(
        X3, i3, W, b, gamma, beta, num_groups=G3, tile_n=8, force_unfused=True))
    assert jnp.allclose(out4, ref3, atol=2e-2, rtol=2e-2), "unfused mismatch"

    print("KERNEL_OK")
</pallas_src>

<mosaic_0001>
module attributes {stable_mosaic.version = 11 : i64} {
  func.func @_fused_kernel(%arg0: i32, %arg1: i32, %arg2: memref<8x64xf32, #tpu.memory_space<vmem>>, %arg3: memref<64x64xf32, #tpu.memory_space<vmem>>, %arg4: memref<1x64xf32, #tpu.memory_space<vmem>>, %arg5: memref<1x64xf32, #tpu.memory_space<vmem>>, %arg6: memref<1x64xf32, #tpu.memory_space<vmem>>, %arg7: memref<8x1xi32, #tpu.memory_space<vmem>>, %arg8: memref<8x128xf32, #tpu.memory_space<vmem>>, %arg9: memref<1x8x64xf32, #tpu.memory_space<vmem>>, %arg10: memref<8x64xf32, #tpu.memory_space<vmem>>) attributes {dimension_semantics = [#tpu.dimension_semantics<arbitrary>, #tpu.dimension_semantics<arbitrary>], iteration_bounds = array<i64: 2, 1>, scalar_prefetch = 0 : i64, scratch_operands = 2 : i64, tpu.core_type = #tpu.core_type<tc>, window_params = [{transform_indices = @transform_0, window_bounds = array<i64: 8, 64>}, {pipeline_mode = #tpu.pipeline_mode<synchronous>, transform_indices = @transform_1, window_bounds = array<i64: 64, 64>}, {pipeline_mode = #tpu.pipeline_mode<synchronous>, transform_indices = @transform_2, window_bounds = array<i64: 1, 64>}, {pipeline_mode = #tpu.pipeline_mode<synchronous>, transform_indices = @transform_3, window_bounds = array<i64: 1, 64>}, {pipeline_mode = #tpu.pipeline_mode<synchronous>, transform_indices = @transform_4, window_bounds = array<i64: 1, 64>}, {transform_indices = @transform_5, window_bounds = array<i64: 8, 1>}, {transform_indices = @transform_6, window_bounds = array<i64: 8, 128>}]} {
    %c0_i32 = arith.constant 0 : i32
    %0 = arith.cmpi eq, %arg0, %c0_i32 : i32
    %c0_i32_0 = arith.constant 0 : i32
    %1 = arith.cmpi eq, %arg1, %c0_i32_0 : i32
    %2 = arith.andi %0, %1 : i1
    %3 = arith.extui %2 : i1 to i32
    %c0_i32_1 = arith.constant 0 : i32
    %4 = arith.cmpi ne, %3, %c0_i32_1 : i32
    scf.if %4 {
      %cst = arith.constant 0.000000e+00 : f32
      %11 = vector.broadcast %cst : f32 to vector<8x64xf32>
      %c0 = arith.constant 0 : index
      %c0_5 = arith.constant 0 : index
      %12 = vector.load %arg10[%c0, %c0_5] : memref<8x64xf32, #tpu.memory_space<vmem>>, vector<8x64xf32>
      tpu.vector_store %arg10[%c0, %c0_5], %11 {strides = array<i32>} : memref<8x64xf32, #tpu.memory_space<vmem>>, vector<8x64xf32>,
    } else {
    }
    %c0_i32_2 = arith.constant 0 : i32
    %5 = arith.cmpi eq, %arg0, %c0_i32_2 : i32
    %6 = arith.extui %5 : i1 to i32
    %c0_i32_3 = arith.constant 0 : i32
    %7 = arith.cmpi ne, %6, %c0_i32_3 : i32
    scf.if %7 {
      %c0 = arith.constant 0 : index
      %c0_5 = arith.constant 0 : index
      %11 = vector.load %arg2[%c0, %c0_5] : memref<8x64xf32, #tpu.memory_space<vmem>>, vector<8x64xf32>
      %c0_6 = arith.constant 0 : index
      %c0_7 = arith.constant 0 : index
      %12 = vector.load %arg3[%c0_6, %c0_7] : memref<64x64xf32, #tpu.memory_space<vmem>>, vector<64x64xf32>
      %c0_8 = arith.constant 0 : index
      %c0_9 = arith.constant 0 : index
      %13 = vector.load %arg4[%c0_8, %c0_9] : memref<1x64xf32, #tpu.memory_space<vmem>>, vector<1x64xf32>
      %c0_10 = arith.constant 0 : index
      %c0_11 = arith.constant 0 : index
      %14 = vector.load %arg5[%c0_10, %c0_11] : memref<1x64xf32, #tpu.memory_space<vmem>>, vector<1x64xf32>
      %c0_12 = arith.constant 0 : index
      %c0_13 = arith.constant 0 : index
      %15 = vector.load %arg6[%c0_12, %c0_13] : memref<1x64xf32, #tpu.memory_space<vmem>>, vector<1x64xf32>
      %cst = arith.constant dense<0.000000e+00> : vector<8x64xf32>
      %16 = tpu.matmul %11, %12, %cst {dimension_numbers = #tpu.dot_dimension_numbers<[1], [0], [0], [1], [0, 0, 1, 1], [], []>} : vector<8x64xf32>, vector<64x64xf32>, vector<8x64xf32> -> vector<8x64xf32>
      %17 = vector.broadcast %13 : vector<1x64xf32> to vector<8x64xf32>
      %18 = arith.addf %16, %17 : vector<8x64xf32>
      %cst_14 = arith.constant dense<0.000000e+00> : vector<8xf32>
      %19 = vector.multi_reduction <add>, %18, %cst_14 [1] : vector<8x64xf32> to vector<8xf32>
      %20 = vector.shape_cast %19 : vector<8xf32> to vector<8x1xf32>
      %cst_15 = arith.constant 1.562500e-02 : f32
      %21 = vector.broadcast %cst_15 : f32 to vector<8x1xf32>
      %22 = arith.mulf %20, %21 : vector<8x1xf32>
      %23 = arith.mulf %18, %18 : vector<8x64xf32>
      %cst_16 = arith.constant dense<0.000000e+00> : vector<8xf32>
      %24 = vector.multi_reduction <add>, %23, %cst_16 [1] : vector<8x64xf32> to vector<8xf32>
      %25 = vector.shape_cast %24 : vector<8xf32> to vector<8x1xf32>
      %cst_17 = arith.constant 1.562500e-02 : f32
      %26 = vector.broadcast %cst_17 : f32 to vector<8x1xf32>
      %27 = arith.mulf %25, %26 : vector<8x1xf32>
      %28 = arith.mulf %22, %22 : vector<8x1xf32>
      %29 = arith.subf %27, %28 : vector<8x1xf32>
      %cst_18 = arith.constant 0.000000e+00 : f32
      %30 = vector.broadcast %cst_18 : f32 to vector<8x1xf32>
      %31 = arith.maximumf %29, %30 : vector<8x1xf32>
      %32 = vector.broadcast %22 : vector<8x1xf32> to vector<8x64xf32>
      %33 = arith.subf %18, %32 : vector<8x64xf32>
      %cst_19 = arith.constant 9.99999974E-6 : f32
      %34 = vector.broadcast %cst_19 : f32 to vector<8x1xf32>
      %35 = arith.addf %31, %34 : vector<8x1xf32>
      %36 = math.rsqrt %35 : vector<8x1xf32>
      %37 = vector.broadcast %36 : vector<8x1xf32> to vector<8x64xf32>
      %38 = arith.mulf %33, %37 : vector<8x64xf32>
      %39 = vector.broadcast %14 : vector<1x64xf32> to vector<8x64xf32>
      %40 = arith.mulf %38, %39 : vector<8x64xf32>
      %41 = vector.broadcast %15 : vector<1x64xf32> to vector<8x64xf32>
      %42 = arith.addf %40, %41 : vector<8x64xf32>
      %cst_20 = arith.constant 0.000000e+00 : f32
      %43 = vector.broadcast %cst_20 : f32 to vector<8x64xf32>
      %44 = arith.maximumf %42, %43 : vector<8x64xf32>
      %c8_i32 = arith.constant 8 : i32
      %45 = arith.muli %arg1, %c8_i32 : i32
      %46 = tpu.iota {dimensions = array<i32: 0>} : vector<8x64xi32>
      %47 = vector.broadcast %45 : i32 to vector<8x64xi32>
      %48 = arith.addi %47, %46 : vector<8x64xi32>
      %c8_i32_21 = arith.constant 8 : i32
      %49 = vector.broadcast %c8_i32_21 : i32 to vector<8x64xi32>
      %50 = arith.cmpi slt, %48, %49 : vector<8x64xi32>
      %cst_22 = arith.constant 0.000000e+00 : f32
      %51 = vector.broadcast %cst_22 : f32 to vector<8x64xf32>
      %52 = arith.select %50, %44, %51 : vector<8x64xi1>, vector<8x64xf32>
      %53 = arith.index_cast %arg1 : i32 to index
      %c0_23 = arith.constant 0 : index
      %c0_24 = arith.constant 0 : index
      %54 = vector.load %arg9[%53, %c0_23, %c0_24] : memref<1x8x64xf32, #tpu.memory_space<vmem>>, vector<1x8x64xf32>
      %55 = vector.shape_cast %54 : vector<1x8x64xf32> to vector<8x64xf32>
      %56 = vector.shape_cast %52 : vector<8x64xf32> to vector<1x8x64xf32>
      tpu.vector_store %arg9[%53, %c0_23, %c0_24], %56 {strides = array<i32>} : memref<1x8x64xf32, #tpu.memory_space<vmem>>, vector<1x8x64xf32>,
      %c0_25 = arith.constant 0 : index
      %c0_26 = arith.constant 0 : index
      %57 = vector.load %arg7[%c0_25, %c0_26] : memref<8x1xi32, #tpu.memory_space<vmem>>, vector<8x1xi32>
      %c0_i32_27 = arith.constant 0 : i32
      %58 = vector.broadcast %c0_i32_27 : i32 to vector<8x1xi32>
      %59 = arith.cmpi eq, %57, %58 : vector<8x1xi32>
      %cst_28 = arith.constant 0.000000e+00 : f32
      %60 = vector.shape_cast %59 : vector<8x1xi1> to vector<8x1xi1>
      %61 = vector.broadcast %60 : vector<8x1xi1> to vector<8x64xi1>
      %62 = vector.broadcast %cst_28 : f32 to vector<8x64xf32>
      %63 = arith.select %61, %52, %62 : vector<8x64xi1>, vector<8x64xf32>
      %cst_29 = arith.constant dense<0xFF800000> : vector<64xf32>
      %64 = vector.multi_reduction <maximumf>, %63, %cst_29 [0] : vector<8x64xf32> to vector<64xf32>
      %65 = vector.shape_cast %64 : vector<64xf32> to vector<1x64xf32>
      %c1_i32_30 = arith.constant 1 : i32
      %66 = vector.broadcast %c1_i32_30 : i32 to vector<8x1xi32>
      %67 = arith.cmpi eq, %57, %66 : vector<8x1xi32>
      %cst_31 = arith.constant 0.000000e+00 : f32
      %68 = vector.shape_cast %67 : vector<8x1xi1> to vector<8x1xi1>
      %69 = vector.broadcast %68 : vector<8x1xi1> to vector<8x64xi1>
      %70 = vector.broadcast %cst_31 : f32 to vector<8x64xf32>
      %71 = arith.select %69, %52, %70 : vector<8x64xi1>, vector<8x64xf32>
      %cst_32 = arith.constant dense<0xFF800000> : vector<64xf32>
      %72 = vector.multi_reduction <maximumf>, %71, %cst_32 [0] : vector<8x64xf32> to vector<64xf32>
      %73 = vector.shape_cast %72 : vector<64xf32> to vector<1x64xf32>
      %c2_i32 = arith.constant 2 : i32
      %74 = vector.broadcast %c2_i32 : i32 to vector<8x1xi32>
      %75 = arith.cmpi eq, %57, %74 : vector<8x1xi32>
      %cst_33 = arith.constant 0.000000e+00 : f32
      %76 = vector.shape_cast %75 : vector<8x1xi1> to vector<8x1xi1>
      %77 = vector.broadcast %76 : vector<8x1xi1> to vector<8x64xi1>
      %78 = vector.broadcast %cst_33 : f32 to vector<8x64xf32>
      %79 = arith.select %77, %52, %78 : vector<8x64xi1>, vector<8x64xf32>
      %cst_34 = arith.constant dense<0xFF800000> : vector<64xf32>
      %80 = vector.multi_reduction <maximumf>, %79, %cst_34 [0] : vector<8x64xf32> to vector<64xf32>
      %81 = vector.shape_cast %80 : vector<64xf32> to vector<1x64xf32>
      %cst_35 = arith.constant 0.000000e+00 : f32
      %82 = vector.broadcast %cst_35 : f32 to vector<5x64xf32>
      %83 = tpu.concatenate %65, %73, %81, %82 in 0 : vector<1x64xf32>, vector<1x64xf32>, vector<1x64xf32>, vector<5x64xf32> -> vector<8x64xf32>
      %c0_36 = arith.constant 0 : index
      %c0_37 = arith.constant 0 : index
      %84 = vector.load %arg10[%c0_36, %c0_37] : memref<8x64xf32, #tpu.memory_space<vmem>>, vector<8x64xf32>
      %85 = arith.maximumf %84, %83 : vector<8x64xf32>
      %c0_38 = arith.constant 0 : index
      %c0_39 = arith.constant 0 : index
      %86 = vector.load %arg10[%c0_38, %c0_39] : memref<8x64xf32, #tpu.memory_space<vmem>>, vector<8x64xf32>
      tpu.vector_store %arg10[%c0_38, %c0_39], %85 {strides = array<i32>} : memref<8x64xf32, #tpu.memory_space<vmem>>, vector<8x64xf32>,
    } else {
    }
    %c1_i32 = arith.constant 1 : i32
    %8 = arith.cmpi eq, %arg0, %c1_i32 : i32
    %9 = arith.extui %8 : i1 to i32
    %c0_i32_4 = arith.constant 0 : i32
    %10 = arith.cmpi ne, %9, %c0_i32_4 : i32
    scf.if %10 {
      %11 = arith.index_cast %arg1 : i32 to index
      %c0 = arith.constant 0 : index
      %c0_5 = arith.constant 0 : index
      %12 = vector.load %arg9[%11, %c0, %c0_5] : memref<1x8x64xf32, #tpu.memory_space<vmem>>, vector<1x8x64xf32>
      %13 = vector.shape_cast %12 : vector<1x8x64xf32> to vector<8x64xf32>
      %c0_6 = arith.constant 0 : index
      %c0_7 = arith.constant 0 : index
      %14 = vector.load %arg7[%c0_6, %c0_7] : memref<8x1xi32, #tpu.memory_space<vmem>>, vector<8x1xi32>
      %c0_8 = arith.constant 0 : index
      %c0_9 = arith.constant 0 : index
      %15 = vector.load %arg10[%c0_8, %c0_9] : memref<8x64xf32, #tpu.memory_space<vmem>>, vector<8x64xf32>
      %16 = tpu.iota {dimensions = array<i32: 1>} : vector<8x8xi32>
      %17 = vector.broadcast %14 : vector<8x1xi32> to vector<8x8xi32>
      %18 = arith.cmpi eq, %17, %16 : vector<8x8xi32>
      %19 = arith.extui %18 : vector<8x8xi1> to vector<8x8xi32>
      %20 = arith.sitofp %19 : vector<8x8xi32> to vector<8x8xf32>
      %cst = arith.constant dense<0.000000e+00> : vector<8x64xf32>
      %21 = tpu.matmul %20, %15, %cst {dimension_numbers = #tpu.dot_dimension_numbers<[1], [0], [0], [1], [0, 0, 1, 1], [], []>} : vector<8x8xf32>, vector<8x64xf32>, vector<8x64xf32> -> vector<8x64xf32>
      %22 = tpu.concatenate %13, %21 in 1 : vector<8x64xf32>, vector<8x64xf32> -> vector<8x128xf32>
      %c0_10 = arith.constant 0 : index
      %c0_11 = arith.constant 0 : index
      %23 = vector.load %arg8[%c0_10, %c0_11] : memref<8x128xf32, #tpu.memory_space<vmem>>, vector<8x128xf32>
      tpu.vector_store %arg8[%c0_10, %c0_11], %22 {strides = array<i32>} : memref<8x128xf32, #tpu.memory_space<vmem>>, vector<8x128xf32>,
    } else {
    }
    return
  }
  func.func @transform_0(%arg0: i32, %arg1: i32) -> (i32, i32) {
    %c1_i32 = arith.constant 1 : i32
    %0 = arith.subi %c1_i32, %arg0 : i32
    %1 = arith.muli %arg1, %0 : i32
    %c0_i32 = arith.constant 0 : i32
    %2 = arith.muli %c0_i32, %arg0 : i32
    %3 = arith.addi %1, %2 : i32
    %c0_i32_0 = arith.constant 0 : i32
    %c0_i32_1 = arith.constant 0 : i32
    return %3, %c0_i32_0 : i32, i32
  }
  func.func @transform_1(%arg0: i32, %arg1: i32) -> (i32, i32) {
    %c0_i32 = arith.constant 0 : i32
    %c0_i32_0 = arith.constant 0 : i32
    %c0_i32_1 = arith.constant 0 : i32
    return %c0_i32, %c0_i32_0 : i32, i32
  }
  func.func @transform_2(%arg0: i32, %arg1: i32) -> (i32, i32) {
    %c0_i32 = arith.constant 0 : i32
    %c0_i32_0 = arith.constant 0 : i32
    %c0_i32_1 = arith.constant 0 : i32
    return %c0_i32, %c0_i32_0 : i32, i32
  }
  func.func @transform_3(%arg0: i32, %arg1: i32) -> (i32, i32) {
    %c0_i32 = arith.constant 0 : i32
    %c0_i32_0 = arith.constant 0 : i32
    %c0_i32_1 = arith.constant 0 : i32
    return %c0_i32, %c0_i32_0 : i32, i32
  }
  func.func @transform_4(%arg0: i32, %arg1: i32) -> (i32, i32) {
    %c0_i32 = arith.constant 0 : i32
    %c0_i32_0 = arith.constant 0 : i32
    %c0_i32_1 = arith.constant 0 : i32
    return %c0_i32, %c0_i32_0 : i32, i32
  }
  func.func @transform_5(%arg0: i32, %arg1: i32) -> (i32, i32) {
    %c0_i32 = arith.constant 0 : i32
    %c0_i32_0 = arith.constant 0 : i32
    return %arg1, %c0_i32 : i32, i32
  }
  func.func @transform_6(%arg0: i32, %arg1: i32) -> (i32, i32) {
    %0 = arith.muli %arg1, %arg0 : i32
    %c0_i32 = arith.constant 0 : i32
    %c0_i32_0 = arith.constant 0 : i32
    return %0, %c0_i32 : i32, i32
  }
}

</mosaic_0001>

<bundles_post_ra>
// kernel: tpu_custom_call.1
= control target key start
LH: loop header
LB: loop body
LE: loop exit
PB: predicated region body
PF: predicated region fallthrough
CT: control target
= control target key end

     0   :  { %11 = vsyncpa [#allocation5], 0  ;;  %s1062_s0 = inlined_call_operand.vmem [shape: f32[8,64], index: 0, kind: input, shape index: {}]   ;;  %s1063_s1 = inlined_call_operand.hbm [shape: f32[64,64], index: 1, kind: input, shape index: {}]   ;;  %s1064_s2 = inlined_call_operand.vmem [shape: f32[1,64], index: 2, kind: input, shape index: {}]   ;;  %s1065_s3 = inlined_call_operand.vmem [shape: f32[1,64], index: 3, kind: input, shape index: {}]   ;;  %s1066_s4 = inlined_call_operand.vmem [shape: f32[1,64], index: 4, kind: input, shape index: {}]   ;;  %s1067_s5 = inlined_call_operand.vmem [shape: s32[8,1], index: 5, kind: input, shape index: {}]   ;;  %s1068_s6 = inlined_call_operand.hbm [shape: f32[8,128], index: 6, kind: output, shape index: {}]  }
   0x1   :  { %12 = vsyncpa [#allocation6], 0 }
   0x2   :  { %14 = vsyncpa [#allocation6 + $0x1], 0  ;;  %s963_s21 = smov 0   ;;  %s965_s22 = smov 0  }
   0x3   :  { %s967_s23 = smov 0  }
   0x4 LB: > { %s714_s24 = sadd.s32 4294967295, %s914_s23   ;;  %s715_s25 = sadd.s32 4294967294, %s914_s23   ;;  %s914_s23 = sphi %s967_s23, %s20_s23   ;;  %s910_s22 = sphi %s965_s22, %s1073_s22   ;;  %s906_s21 = sphi %s963_s21, %s1072_s21  }
   0x5   : > { %s32_s26 = sadd.s32 1, %s910_s22  ;;  %p716_p0 = scmp.ge.s32.totalorder %s914_s23, 1 }
   0x6   : > { %p34_p1 = scmp.ge.s32.totalorder %s32_s26, 2  ;;  %p205_p2 = scmp.lt.s32.totalorder %s914_s23, 3 }
   0x7   : > { %p985_p3 = scmp.eq.s32.totalorder %s714_s24, 0  ;;  %s916_s29 = smov [#allocation4]  }
   0x8   : > { %s1075_s26 = smov (%p34_p1, %s32_s26), 0  ;;  %p991_p4 = pnand %p716_p0, %p205_p2 }
   0x9   : > { %s217_s30 = sshll.u32 %s916_s29, 4  ;;  %s218_s30 = int_to_ptr.vmem [resolvable:$true] %s217_s30 }
   0xa   : > { %p780_p5 = pneg %p991_p4  ;;  %s845_s7 = scalar_lea.vmem %s218_s30, 1024 }
   0xb   : > { %p846_p8 = scmp.ne.s32.totalorder %s218_s30, %s845_s7  ;;  %p853_p11 = scmp.lt.s32.totalorder %s218_s30, %s218_s30 }
   0xc   : > { %p781_p6 = pnand %p985_p3, %p780_p5  ;;  %p854_p12 = scmp.lt.s32.totalorder %s845_s7, %s845_s7 }
   0xe   : > { %p836_p7 = pneg %p781_p6  ;;  %p855_p13 = por %p854_p12, %p853_p11 }
  0x10   : > { %p848_p9 = pnand %p846_p8, %p836_p7 }
  0x12   : > { %p849_p10 = pneg %p848_p9 }
  0x14   : > { %p856_p0 = pnand %p855_p13, %p849_p10 }
  0x16   : > { %859 = shalt.err (!%p856_p0)
}
  0x17   : > { %s917_s8 = smov 128   ;;  %s918_s9 = smov 8  }
  0x18   : > { %783 = dma.hbm_to_vmem [thread:$0]  (!%p781_p6), %s1063_s1, 1024, %s218_s30, [#allocation5], %s917_s8, %s917_s8, %s918_s9  }
  0x19   : > { %260 = sbr.rel (%p991_p4) target bundleno = 908 (0x38c), region = 44 }
  0x1e   : > { %897 = dma.done.wait (%p985_p3), [#allocation5], 1024  }
  0x1f   : > { %899 = vsyncadd (%p985_p3), [#allocation5], 4294966272  ;;  %p308_p1 = scmp.eq.s32.totalorder %s906_s21, 0 }
  0x20   : > { %vm314_vm0 = vcmask (%p308_p1), 523264   ;;  %v919_v0 = vmov (%p308_p1), 0.0  }
  0x21   : > { %313 = sbr.rel (!%p308_p1) target bundleno = 38 (0x26), region = 52  ;;  %315 = vst.msk [vmem:[#allocation3] sm:$0xff] (%p308_p1), %vm314_vm0, %v919_v0 }
  0x26 PF: > { %p724_p2 = scmp.ne.s32.totalorder %s906_s21, 0 }
  0x28   : > { %318 = sbr.rel (%p724_p2) target bundleno = 450 (0x1c2), region = 56 }
  0x2d   : > { %v327_v1 = vld [vmem:[#allocation4 + $0x38] sm:$0xff]  ;;  %v920_v2 = vmov 0.0   ;;  %v326_v3 = vld [vmem:[#allocation4 + $0x30] sm:$0xff]  ;;  %vm921_vm1 = vmmov 0   ;;  %v325_v4 = vld [vmem:[#allocation4 + $0x28] sm:$0xff]  ;;  %vm337_vm2 = vcmask 523264  }
  0x2e   : > { %748 = vmatprep.subr.mxu0 %v920_v2  ;;  %764 = vmatprep.mubr.msk.f32.mxu0 %vm921_vm1, %v920_v2  ;;  %v324_v5 = vld [vmem:[#allocation4 + $0x20] sm:$0xff]  ;;  %v323_v6 = vld [vmem:[#allocation4 + $0x18] sm:$0xff]  ;;  %v322_v7 = vld [vmem:[#allocation4 + $0x10] sm:$0xff]  ;;  %v922_v12 = vmov 0   ;;  %vm494_vm9 = vcmask 1040384   ;;  %vm496_vm10 = vcmask 1041408  }
  0x2f   : > { %749 = vmatpush3.msra.mxu0 %v327_v1  ;;  %v321_v8 = vld [vmem:[#allocation4 + $0x8] sm:$0xff]  ;;  %v320_v9 = vld [vmem:[#allocation4] sm:$0xff]  ;;  %v319_v10 = vld [vmem:[%s1062_s0] sm:$0xff]  ;;  %829 = vset.pattern.permute.xlu1 %v922_v12  ;;  %vm498_vm11 = vcmask 1042432  }
  0x30   : > { %750 = vmatprep.subr.mxu0 %v920_v2  ;;  %v451_v11 = vld [vmem:[%s1067_s5] sm:$0xff]  ;;  %830 = vset.pattern.permute.xlu0 %v922_v12 }
  0x31   : > { %751 = vmatpush3.msra.mxu0 %v326_v3  ;;  %vm452_vm3 = vcmp.eq.s32.totalorder %v451_v11, 0  ;;  %vm466_vm4 = vcmp.eq.s32.totalorder %v451_v11, 1  ;;  %vm480_vm5 = vcmp.eq.s32.totalorder %v451_v11, 2  ;;  %v725_v16 = vld [vmem:[%s1064_s2] ss:$0 sm:$0xff]  ;;  %v500_v3 = vld [vmem:[#allocation3] sm:$0xff] }
  0x32   : > { %752 = vmatprep.subr.mxu0 %v920_v2  ;;  %v453_v13 = vsel %vm452_vm3, 1, %v922_v12  ;;  %v481_v14 = vsel %vm480_vm5, 1, %v922_v12  ;;  %v467_v15 = vsel %vm466_vm4, 1, %v922_v12  ;;  %v727_v34 = vld [vmem:[%s1065_s3] ss:$0 sm:$0xff] }
  0x33   : > { %753 = vmatpush3.msra.mxu0 %v325_v4  ;;  %455 = vperm.xlu1 %829, %v453_v13   ;;  %v728_v36 = vld [vmem:[%s1066_s4] ss:$0 sm:$0xff] }
  0x34   : > { %754 = vmatprep.subr.mxu0 %v920_v2 }
  0x35   : > { %755 = vmatpush3.msra.mxu0 %v324_v5 }
  0x36   : > { %756 = vmatprep.subr.mxu0 %v920_v2 }
  0x37   : > { %757 = vmatpush3.msra.mxu0 %v323_v6  ;;  %469 = vperm.xlu1 %829, %v467_v15  }
  0x38   : > { %758 = vmatprep.subr.mxu0 %v920_v2 }
  0x39   : > { %759 = vmatpush3.msra.mxu0 %v322_v7 }
  0x3a   : > { %760 = vmatprep.subr.mxu0 %v920_v2 }
  0x3b   : > { %761 = vmatpush3.msra.mxu0 %v321_v8 }
  0x3c   : > { %762 = vmatprep.subr.mxu0 %v920_v2 }
  0x3d   : > { %763 = vmatpush3.msra.mxu0 %v320_v9 }
  0x3e   : > { %765 = vmatmul.mubr.msk.f32.vlgmr.msra.gmra.mxu0 %vm337_vm2, %v319_v10 }
  0xae   : > { %v456_v32 = vpop.permute.xlu1 %455 }
  0xaf   : > { %vm457_vm7 = vcmp.eq.s32.totalorder %v456_v32, 1 }
  0xb2   : > { %v470_v40 = vpop.permute.xlu1 %469 }
  0xb3   : > { %vm471_vm8 = vcmp.eq.s32.totalorder %v470_v40, 1 }
  0xfe   : > { %v407_v17 = vpop.f32.mrf.mxu0 }
  0xff   : > { %v408_v18 = vadd.f32 %v725_v16, %v407_v17 }
 0x100   : > { %v766_v19 = vpop.f32.mrf.mxu0 }
 0x101   : > { %v411_v20 = vsel %vm337_vm2, %v408_v18, 0.0  ;;  %v415_v21 = vmul.f32 %v408_v18, %v408_v18 }
 0x102   : > { %412 = vadd.xlane.f32.xlu0 %v411_v20 }
 0x103   : > { %v416_v22 = vsel %vm337_vm2, %v415_v21, 0.0 }
 0x106   : > { %417 = vadd.xlane.f32.xlu0 %v416_v22 }
 0x11c   : > { %483 = vperm.xlu0 %830, %v481_v14  }
 0x18b   : > { %v413_v23 = vpop.xlane.xlu0 %412 }
 0x18c   : > { %v414_v24 = vmul.f32 0.015625, %v413_v23 }
 0x18e   : > { %v420_v26 = vmul.f32 %v414_v24, %v414_v24  ;;  %v423_v31 = vsub.f32 %v408_v18, %v414_v24 }
 0x18f   : > { %v418_v25 = vpop.xlane.xlu0 %417 }
 0x190   : > { %v419_v27 = vmul.f32 0.015625, %v418_v25 }
 0x192   : > { %v421_v28 = vsub.f32 %v419_v27, %v420_v26 }
 0x194   : > { %v422_v29 = vmax.f32 %v421_v28, 0.0 }
 0x196   : > { %v424_v30 = vadd.f32 1e-05, %v422_v29 }
 0x197   : > { %v484_v38 = vpop.permute.xlu0 %483 }
 0x198   : > { %831 = vrsqrt.f32 %v424_v30  ;;  %vm485_vm6 = vcmp.eq.s32.totalorder %v484_v38, 1 }
 0x1a5   : > { %v832_v33 = vpop.eup %831 }
 0x1a6   : > { %v426_v35 = vmul.f32 %v832_v33, %v423_v31 }
 0x1a8   : > { %v433_v37 = vmul.f32 %v727_v34, %v426_v35 }
 0x1aa   : > { %v440_v39 = vadd.f32 %v728_v36, %v433_v37 }
 0x1ac   : > { %v441_v41 = vmax.f32 %v440_v39, 0.0 }
 0x1ae   : > { %450 = vst.msk [vmem:[#allocation2] sm:$0xff] %vm337_vm2, %v441_v41  ;;  %v458_v42 = vsel %vm457_vm7, %v441_v41, 0.0  ;;  %v472_v43 = vsel %vm471_vm8, %v441_v41, 0.0  ;;  %v486_v44 = vsel %vm485_vm6, %v441_v41, 0.0 }
 0x1af   : > { %v459_v45 = vsel %vm337_vm2, %v458_v42, -inf  ;;  %v473_v46 = vsel %vm337_vm2, %v472_v43, -inf  ;;  %v487_v47 = vsel %vm337_vm2, %v486_v44, -inf }
 0x1b0   : > { %v460_v48 = vrot.slane %v459_v45, 4  ;;  %v474_v49 = vrot.slane %v473_v46, 4  ;;  %v488_v50 = vrot.slane %v487_v47, 4 }
 0x1b2   : > { %v461_v51 = vmax.f32 %v459_v45, %v460_v48  ;;  %v475_v52 = vmax.f32 %v473_v46, %v474_v49  ;;  %v489_v53 = vmax.f32 %v487_v47, %v488_v50 }
 0x1b4   : > { %v462_v54 = vrot.slane %v461_v51, 2  ;;  %v476_v55 = vrot.slane %v475_v52, 2  ;;  %v490_v56 = vrot.slane %v489_v53, 2 }
 0x1b6   : > { %v463_v57 = vmax.f32 %v461_v51, %v462_v54  ;;  %v477_v58 = vmax.f32 %v475_v52, %v476_v55  ;;  %v491_v59 = vmax.f32 %v489_v53, %v490_v56 }
 0x1b8   : > { %v464_v60 = vrot.slane %v463_v57, 1  ;;  %v478_v61 = vrot.slane %v477_v58, 1  ;;  %v492_v62 = vrot.slane %v491_v59, 1 }
 0x1ba   : > { %v465_v63 = vmax.f32 %v463_v57, %v464_v60  ;;  %v479_v0 = vmax.f32 %v477_v58, %v478_v61  ;;  %v493_v1 = vmax.f32 %v491_v59, %v492_v62 }
 0x1bc   : > { %v495_v2 = vsel %vm494_vm9, %v465_v63, %v479_v0 }
 0x1bd   : > { %v497_v4 = vsel %vm496_vm10, %v495_v2, %v493_v1 }
 0x1be   : > { %v499_v5 = vsel %vm498_vm11, %v497_v4, 0.0 }
 0x1bf   : > { %v501_v6 = vmax.f32 %v500_v3, %v499_v5 }
 0x1c1   : > { %502 = vst.msk [vmem:[#allocation3] sm:$0xff] %vm337_vm2, %v501_v6 }
 0x1c2 PF: > { %p729_p3 = scmp.ne.s32.totalorder %s906_s21, 1 }
 0x1c3   : > { %s926_s21 = smov (!%p729_p3), 64  }
 0x1c4   : > { %506 = sbr.rel (%p729_p3) target bundleno = 895 (0x37f), region = 60 }
 0x1c9   : > { %v510_v7 = vld [vmem:[%s1067_s5] sm:$0xff]  ;;  %v511_v8 = vld [vmem:[#allocation3] sm:$0xff]  ;;  %v923_v9 = vmov 0   ;;  %v924_v10 = vmov 0.0   ;;  %vm925_vm12 = vmmov 0   ;;  %v512_v11 = vlaneseq }
 0x1ca   : > { %833 = vset.pattern.permute.xlu0 %v923_v9  ;;  %767 = vmatprep.subr.mxu0 %v924_v10  ;;  %vm520_vm13 = vcmask 64512   ;;  %vm598_vm15 = vcmask 523264   ;;  %v509_v17 = vld [vmem:[#allocation2] sm:$0xff] }
 0x1cb   : > { %515 = vperm.xlu0 %833, %v510_v7   ;;  %768 = vmatpush3.msra.mxu0 %v511_v8  ;;  %v513_v12 = vand.u32 127, %v512_v11 }
 0x1cc   : > { %769 = vmatprep.mubr.msk.f32.mxu0 %vm925_vm12, %v924_v10 }
 0x246   : > { %v516_v13 = vpop.permute.xlu0 %515 }
 0x247   : > { %vm517_vm14 = vcmp.eq.s32.totalorder %v516_v13, %v513_v12 }
 0x248   : > { %v730_v14 = vsel %vm517_vm14, 1.0, %v924_v10 }
 0x249   : > { %770 = vmatmul.mubr.msk.f32.vlgmr.msra.gmra.mxu0 %vm520_vm13, %v730_v14 }
 0x309   : > { %v590_v15 = vpop.f32.mrf.mxu0 }
 0x30a   : > { %595 = vrot.lane.b32.xlu0 %v590_v15, %s926_s21 }
 0x30b   : > { %v771_v16 = vpop.f32.mrf.mxu0 }
 0x37c   : > { %v596_v18 = vpop.permute.xlu0 %595 }
 0x37d   : > { %v599_v19 = vsel %vm598_vm15, %v509_v17, %v596_v18 }
 0x37e   : > { %600 = vst [vmem:[#allocation7] sm:$0xff] %v599_v19 }
 0x37f PF: > { %p1039_p4 = scmp.eq.s32.totalorder %s714_s24, 1  ;;  %s927_s7 = smov [#allocation7]  }
 0x380   : > { %s616_s8 = sshll.u32 %s927_s7, 4  ;;  %s617_s8 = int_to_ptr.vmem [resolvable:$true] %s616_s8 }
 0x381   : > { %s860_s9 = scalar_lea.vmem %s617_s8, 128  ;;  %s866_s10 = scalar_lea.vmem %s617_s8, 256 }
 0x382   : > { %p861_p5 = scmp.ne.s32.totalorder %s617_s8, %s860_s9  ;;  %p867_p8 = scmp.lt.s32.totalorder %s617_s8, %s617_s8 }
 0x383   : > { %p868_p9 = scmp.lt.s32.totalorder %s866_s10, %s860_s9 }
 0x384   : > { %p862_p6 = pnand %p861_p5, %p1039_p4 }
 0x385   : > { %p869_p10 = por %p868_p9, %p867_p8 }
 0x386   : > { %p863_p7 = pneg %p862_p6 }
 0x388   : > { %p870_p11 = pnand %p869_p10, %p863_p7 }
 0x38a   : > { %873 = shalt.err (!%p870_p11)
}
 0x38b   : > { %777 = dma.vmem_to_hbm [thread:$0]  (%p1039_p4), %s617_s8, 128, %s1068_s6, [#allocation6]  }
 0x38c PF: > { %p791_p12 = scmp.ge.s32.totalorder %s914_s23, 2  ;;  %p792_p13 = scmp.eq.s32.totalorder %s715_s25, 1 }
 0x38e   : > { %p785_p0 = pnand %p792_p13, %p791_p12 }
 0x390   : > { %p786_p1 = pneg %p785_p0 }
 0x392   : > { %901 = dma.done.wait (%p786_p1), [#allocation6], 128  }
 0x393   : > { %903 = vsyncadd (%p786_p1), [#allocation6], 4294967168  ;;  %s20_s23 = sadd.s32 1, %s914_s23   ;;  %s1072_s21 = smov %s910_s22 }
 0x394   : > { %p17_p2 = scmp.ge.s32.totalorder %s20_s23, 4   ;;  %s1073_s22 = smov %s1075_s26 }
 0x396   :  { %19 = sbr.rel (!%p17_p2) target bundleno = 4 (0x4), region = 101 }
 0x39b   :  { %634 = vsyncpa [#allocation5], 1 }
 0x39c   :  { %636 = vsyncpa [#allocation5 + $0x1], 1 }
 0x39d   :  { %637 = vsyncpa [#allocation6], 1 }
 0x39e   :  { %639 = vsyncpa [#allocation6 + $0x1], 1 }

</bundles_post_ra>
